<compile_context>
chip_gen: v7x
topology: tpu7x:2x2x1
jax: 0.10.0
libtpu: 0.0.40
codegen_flags: <defaults>
</compile_context>

<pallas_src>
import jax
import jax.numpy as jnp
from jax.experimental import pallas as pl
from jax.experimental.pallas import tpu as pltpu


_A_RESIDENT_MAX_BYTES = 8 * 1024 * 1024   # keep A fully resident below this
_VMEM_BUDGET_BYTES = 36 * 1024 * 1024     # live-tile budget, safe on v7x too
_VMEM_LIMIT_BYTES = 48 * 1024 * 1024      # scoped-VMEM limit handed to Mosaic


# ---------------------------------------------------------------------------
# Kernels
# ---------------------------------------------------------------------------

def _nconv_resident_kernel(a_ref, x_ref, o_ref):
    """Fast path: A resident, full V contraction in one shot, no scratch.

    a_ref: (V, W)   x_ref: (V, tn)   o_ref: (W, tn)
    """
    o_ref[...] = jax.lax.dot_general(
        a_ref[...], x_ref[...],
        dimension_numbers=(((0,), (0,)), ((), ())),
        preferred_element_type=jnp.float32).astype(o_ref.dtype)


def _nconv_tiled_kernel(a_ref, x_ref, o_ref, acc_ref):
    """General path: grid=(n, w, v) with v (reduction) last, f32 accumulator.

    a_ref: (tv, tw)   x_ref: (tv, tn)   o_ref/acc_ref: (tw, tn)
    """
    part = jax.lax.dot_general(
        a_ref[...], x_ref[...],
        dimension_numbers=(((0,), (0,)), ((), ())),
        preferred_element_type=jnp.float32)

    @pl.when(pl.program_id(2) == 0)
    def _():
        acc_ref[...] = part            # straight store, no zero-fill + add

    @pl.when(pl.program_id(2) != 0)
    def _():
        acc_ref[...] += part

    @pl.when(pl.program_id(2) == pl.num_programs(2) - 1)
    def _():
        o_ref[...] = acc_ref[...].astype(o_ref.dtype)


# ---------------------------------------------------------------------------
# Tile selection helpers
# ---------------------------------------------------------------------------

def _pick_tile(dim, unit, target):
    """Largest multiple of `unit` that divides `dim`, capped at `target`;
    falls back to the full dim (always a legal BlockSpec block dim)."""
    if dim % unit != 0:
        return dim
    t = min(target, dim)
    t -= t % unit
    while t >= unit and dim % t != 0:
        t -= unit
    return t if t >= unit else dim


# ---------------------------------------------------------------------------
# Wrapper
# ---------------------------------------------------------------------------

def _nconv_2d(xf, A):
    """xf: (V, N) lane-folded activations, A: (V, W). Returns (W, N) = A^T @ xf."""
    V, N = xf.shape
    _, W = A.shape
    dtype = xf.dtype
    itemsize = jnp.dtype(dtype).itemsize
    sub = {1: 32, 2: 16}.get(itemsize, 8)   # dtype-aware sublane unit

    # ---------------- fast path: A fully resident, no reduction tiling -----
    a_bytes = V * W * itemsize
    if a_bytes <= _A_RESIDENT_MAX_BYTES:

        def fast_footprint(tn_):
            # A buffers (upper bound 2x) + double-buffered x and out tiles.
            return 2 * a_bytes + 2 * (V + W) * tn_ * itemsize

        tn = None
        for cap in (1024, 512, 256, 128):
            cand = _pick_tile(N, 128, cap)
            if fast_footprint(cand) <= _VMEM_BUDGET_BYTES:
                tn = cand
                break

        if tn is not None:
            # Give the v7x megacore at least 2 parallel grid steps when the
            # folded lane dim allows it.
            if N // tn < 2 and N % 256 == 0:
                tn = N // 2

            grid_spec = pltpu.PrefetchScalarGridSpec(
                num_scalar_prefetch=0,
                grid=(N // tn,),
                in_specs=[
                    pl.BlockSpec((V, W), lambda n: (0, 0)),    # A: resident
                    pl.BlockSpec((V, tn), lambda n: (0, n)),   # xf
                ],
                out_specs=pl.BlockSpec((W, tn), lambda n: (0, n)),
            )
            return pl.pallas_call(
                _nconv_resident_kernel,
                out_shape=jax.ShapeDtypeStruct((W, N), dtype),
                grid_spec=grid_spec,
                compiler_params=pltpu.CompilerParams(
                    dimension_semantics=("parallel",),
                    vmem_limit_bytes=_VMEM_LIMIT_BYTES),
            )(A, xf)

    # ---------------- general fallback: tiled reduction over V -------------
    def tiled_footprint(tv_, tw_, tn_):
        return (2 * (tv_ * tn_ + tv_ * tw_ + tw_ * tn_) * itemsize
                + tw_ * tn_ * 4)

    tv = tw = tn = None
    for cap_v, cap_w, cap_n in ((1024, 512, 512), (512, 256, 512),
                                (512, 256, 256), (256, 128, 256),
                                (128, 128, 128), (sub, 128, 128)):
        tv = _pick_tile(V, sub, cap_v)
        tw = _pick_tile(W, 128, cap_w)
        tn = _pick_tile(N, 128, cap_n)
        if tiled_footprint(tv, tw, tn) <= _VMEM_BUDGET_BYTES:
            break

    grid = (N // tn, W // tw, V // tv)    # N outer, reduction (V) last
    grid_spec = pltpu.PrefetchScalarGridSpec(
        num_scalar_prefetch=0,
        grid=grid,
        in_specs=[
            pl.BlockSpec((tv, tw), lambda n, w, v: (v, w)),   # A (small, re-fetched)
            pl.BlockSpec((tv, tn), lambda n, w, v: (v, n)),   # xf (fetched once per n,v)
        ],
        out_specs=pl.BlockSpec((tw, tn), lambda n, w, v: (w, n)),
        scratch_shapes=[pltpu.VMEM((tw, tn), jnp.float32)],
    )
    return pl.pallas_call(
        _nconv_tiled_kernel,
        out_shape=jax.ShapeDtypeStruct((W, N), dtype),
        grid_spec=grid_spec,
        compiler_params=pltpu.CompilerParams(
            dimension_semantics=("parallel", "parallel", "arbitrary"),
            vmem_limit_bytes=_VMEM_LIMIT_BYTES),
    )(A, xf)


def nconv(x, A):
    """x: (B, V, C), A: (V, W) -> (B, W, C); matches torch.einsum('nvc,vw->nwc')."""
    B, V, C = x.shape
    V2, W = A.shape
    assert V2 == V, "A's first dim must match x's node dim"
    A = A.astype(x.dtype)                       # mirrors `A.to(x)`

    N = B * C
    # Lane-fold batch*channels: (B,V,C) -> (V,B,C) -> (V, B*C).
    xf = jnp.transpose(x, (1, 0, 2)).reshape(V, N)
    out2d = _nconv_2d(xf, A)                    # (W, B*C)
    # Unfold: (W, B*C) -> (W,B,C) -> (B,W,C).  Result is contiguous.
    return jnp.transpose(out2d.reshape(W, B, C), (1, 0, 2))


if __name__ == "__main__":
    # Small shapes consistent with the module: x (batch, nodes, channels), A (nodes, nodes_out)
    B, V, W, C = 2, 16, 16, 32
    key = jax.random.PRNGKey(0)
    kx, ka = jax.random.split(key)
    x = jax.random.normal(kx, (B, V, C), jnp.float32)
    A = jax.random.normal(ka, (V, W), jnp.float32)

    out = jax.block_until_ready(nconv(x, A))
    ref = jnp.einsum('nvc,vw->nwc', x, A)
    assert out.shape == (B, W, C)
    assert out.dtype == x.dtype
    assert bool(jnp.allclose(out, ref, atol=1e-4, rtol=1e-4)), (
        float(jnp.max(jnp.abs(out - ref))))

    # Also exercise the multi-step (N-tiled) fast path.
    B2, V2, W2, C2 = 4, 24, 24, 64          # folded lane dim N = 256 -> 2 tiles
    x2 = jax.random.normal(kx, (B2, V2, C2), jnp.float32)
    A2 = jax.random.normal(ka, (V2, W2), jnp.float32)
    out2 = jax.block_until_ready(nconv(x2, A2))
    ref2 = jnp.einsum('nvc,vw->nwc', x2, A2)
    assert bool(jnp.allclose(out2, ref2, atol=1e-4, rtol=1e-4)), (
        float(jnp.max(jnp.abs(out2 - ref2))))

    print("KERNEL_OK")
</pallas_src>

<mosaic_0001>
module attributes {stable_mosaic.version = 11 : i64} {
  func.func @_nconv_resident_kernel(%arg0: i32, %arg1: memref<16x16xf32, #tpu.memory_space<vmem>>, %arg2: memref<16x64xf32, #tpu.memory_space<vmem>>, %arg3: memref<16x64xf32, #tpu.memory_space<vmem>>) attributes {dimension_semantics = [#tpu.dimension_semantics<parallel>], iteration_bounds = array<i64: 1>, scalar_prefetch = 0 : i64, scratch_operands = 0 : i64, tpu.core_type = #tpu.core_type<tc>, window_params = [{pipeline_mode = #tpu.pipeline_mode<synchronous>, transform_indices = @transform_0, window_bounds = array<i64: 16, 16>}, {transform_indices = @transform_1, window_bounds = array<i64: 16, 64>}, {transform_indices = @transform_2, window_bounds = array<i64: 16, 64>}]} {
    %c0 = arith.constant 0 : index
    %c0_0 = arith.constant 0 : index
    %0 = vector.load %arg1[%c0, %c0_0] : memref<16x16xf32, #tpu.memory_space<vmem>>, vector<16x16xf32>
    %c0_1 = arith.constant 0 : index
    %c0_2 = arith.constant 0 : index
    %1 = vector.load %arg2[%c0_1, %c0_2] : memref<16x64xf32, #tpu.memory_space<vmem>>, vector<16x64xf32>
    %cst = arith.constant dense<0.000000e+00> : vector<16x64xf32>
    %2 = tpu.matmul %0, %1, %cst {dimension_numbers = #tpu.dot_dimension_numbers<[0], [0], [1], [1], [0, 1, 1, 1], [], []>} : vector<16x16xf32>, vector<16x64xf32>, vector<16x64xf32> -> vector<16x64xf32>
    %c0_3 = arith.constant 0 : index
    %c0_4 = arith.constant 0 : index
    %3 = vector.load %arg3[%c0_3, %c0_4] : memref<16x64xf32, #tpu.memory_space<vmem>>, vector<16x64xf32>
    tpu.vector_store %arg3[%c0_3, %c0_4], %2 {strides = array<i32>} : memref<16x64xf32, #tpu.memory_space<vmem>>, vector<16x64xf32>,
    return
  }
  func.func @transform_0(%arg0: i32) -> (i32, i32) {
    %c0_i32 = arith.constant 0 : i32
    %c0_i32_0 = arith.constant 0 : i32
    %c0_i32_1 = arith.constant 0 : i32
    return %c0_i32, %c0_i32_0 : i32, i32
  }
  func.func @transform_1(%arg0: i32) -> (i32, i32) {
    %c0_i32 = arith.constant 0 : i32
    %c0_i32_0 = arith.constant 0 : i32
    return %c0_i32, %arg0 : i32, i32
  }
  func.func @transform_2(%arg0: i32) -> (i32, i32) {
    %c0_i32 = arith.constant 0 : i32
    %c0_i32_0 = arith.constant 0 : i32
    return %c0_i32, %arg0 : i32, i32
  }
}

</mosaic_0001>

<bundles_post_ra>
// kernel: tpu_custom_call.1
= control target key start
LH: loop header
LB: loop body
LE: loop exit
PB: predicated region body
PF: predicated region fallthrough
CT: control target
= control target key end

     0   :  { %7 = vsyncpa [#allocation3], 0  ;;  %s339_s0 = inlined_call_operand.hbm [shape: f32[16,16], index: 0, kind: input, shape index: {}]   ;;  %s340_s1 = inlined_call_operand.hbm [shape: f32[16,64], index: 1, kind: input, shape index: {}]   ;;  %s341_s2 = inlined_call_operand.hbm [shape: f32[16,64], index: 2, kind: output, shape index: {}]  }
   0x1   :  { %8 = vsyncpa [#allocation6], 0 }
   0x2   :  { %9 = vsyncpa [#allocation4], 0  ;;  %s274_s9 = smov [#allocation2]   ;;  %s202_s13 = scalar_lea.hbm %s339_s0, 256 }
   0x3   :  { %s15_s10 = sshll.u32 %s274_s9, 4  ;;  %p203_p0 = scmp.ne.s32.totalorder %s339_s0, %s202_s13  ;;  %s16_s10 = int_to_ptr.vmem [resolvable:$true] %s15_s10 }
   0x4   :  { %p206_p1 = scmp.lt.u32.totalorder %s202_s13, %s339_s0 }
   0x6   :  { %p208_p2 = pnand %p206_p1, %p203_p0 }
   0x8   :  { %211 = shalt.err (!%p208_p2)
}
   0x9   :  { %s212_s18 = scalar_lea.vmem %s16_s10, 256  ;;  %p217_p4 = scmp.lt.s32.totalorder %s16_s10, %s16_s10 }
   0xa   :  { %p213_p3 = scmp.ne.s32.totalorder %s16_s10, %s212_s18  ;;  %p218_p5 = scmp.lt.s32.totalorder %s212_s18, %s212_s18 }
   0xc   :  { %p219_p6 = por %p218_p5, %p217_p4 }
   0xe   :  { %p220_p7 = pnand %p219_p6, %p213_p3 }
  0x10   :  { %223 = shalt.err (!%p220_p7)
}
  0x11   :  { %s275_s19 = smov 128   ;;  %s276_s20 = smov 8  }
  0x12   :  { %21 = dma.hbm_to_vmem [thread:$0]  %s339_s0, 256, %s16_s10, [#allocation3], %s275_s19, %s275_s19, %s276_s20  }
  0x13   :  { %s277_s23 = smov [#allocation5]   ;;  %s224_s27 = scalar_lea.hbm %s340_s1, 256 }
  0x14   :  { %s27_s24 = sshll.u32 %s277_s23, 4  ;;  %p225_p8 = scmp.ne.s32.totalorder %s340_s1, %s224_s27  ;;  %s28_s24 = int_to_ptr.vmem [resolvable:$true] %s27_s24 }
  0x15   :  { %p228_p9 = scmp.lt.u32.totalorder %s224_s27, %s340_s1 }
  0x17   :  { %p230_p10 = pnand %p228_p9, %p225_p8 }
  0x19   :  { %233 = shalt.err (!%p230_p10)
}
  0x1a   :  { %s234_s4 = scalar_lea.vmem %s28_s24, 256  ;;  %p239_p12 = scmp.lt.s32.totalorder %s28_s24, %s28_s24 }
  0x1b   :  { %p235_p11 = scmp.ne.s32.totalorder %s28_s24, %s234_s4  ;;  %p240_p13 = scmp.lt.s32.totalorder %s234_s4, %s234_s4 }
  0x1d   :  { %p241_p0 = por %p240_p13, %p239_p12 }
  0x1f   :  { %p242_p1 = pnand %p241_p0, %p235_p11 }
  0x21   :  { %245 = shalt.err (!%p242_p1)
}
  0x22   :  { %33 = dma.hbm_to_vmem [thread:$0]  %s340_s1, 256, %s28_s24, [#allocation6], %s275_s19, %s275_s19, %s276_s20  }
  0x23   :  { %268 = dma.done.wait [#allocation3], 256  }
  0x24   :  { %269 = vsyncadd [#allocation3], 4294967040 }
  0x25   :  { %270 = dma.done.wait [#allocation6], 256  }
  0x26   :  { %271 = vsyncadd [#allocation6], 4294967040  ;;  %v40_v0 = vld [vmem:[#allocation2] sm:$0xff]  ;;  %v42_v1 = vld [vmem:[#allocation5] sm:$0xff]  ;;  %vm76_vm0 = vcmask 130048   ;;  %s278_s6 = smov [#allocation7]  }
  0x27   :  { %44 = vxpose.xlu0.b32.start [1/2] (short) (narrow) %v40_v0, 16  ;;  %v43_v2 = vld [vmem:[#allocation5 + $0x8] sm:$0xff]  ;;  %v41_v3 = vld [vmem:[#allocation2 + $0x8] sm:$0xff]  ;;  %s166_s1 = sshll.u32 %s278_s6, 4  ;;  %vm158_vm1 = vcmask 523264   ;;  %s167_s1 = int_to_ptr.vmem [resolvable:$true] %s166_s1 }
  0x28   :  { %v192_v4 = vpack.c.bf16 %v43_v2, %v42_v1  ;;  %s246_s7 = scalar_lea.vmem %s167_s1, 256  ;;  %p251_p3 = scmp.lt.s32.totalorder %s167_s1, %s167_s1 }
  0x29   :  { %p247_p2 = scmp.ne.s32.totalorder %s167_s1, %s246_s7  ;;  %p252_p4 = scmp.lt.s32.totalorder %s246_s7, %s246_s7 }
  0x2a   :  { %193 = vmatprep.subr.bf16.mxu0 %v192_v4 }
  0x2b   :  { %45 = vxpose.xlu0.b32.end [2/2] (short) (narrow) %v41_v3, 16  ;;  %195 = vmatpush3.bf16.msra.mxu0 %v192_v4  ;;  %p253_p5 = por %p252_p4, %p251_p3 }
  0x2d   :  { %p254_p6 = pnand %p253_p5, %p247_p2 }
  0xa7   :  { %v60_v5 = vpop.trf.xlu0 }
  0xa8   :  { %189 = vmatprep.mubr.msk.f32.mxu0 %vm76_vm0, %v60_v5 }
  0xab   :  { %v61_v6 = vpop.trf.xlu0 }
  0xac   :  { %190 = vmatmul.mubr.msk.f32.vlgmr.msra.gmra.mrb[0].mxu0 %vm76_vm0, %v61_v6 }
 0x17f   :  { %v191_v7 = vpop.f32.mrb[0].mxu0 }
 0x180   :  { %160 = vst.msk [vmem:[#allocation7 + $0x8] sm:$0xff] %vm158_vm1, %v191_v7  ;;  %v149_v8 = vpop.f32.mrb[1].mxu0 }
 0x181   :  { %159 = vst.msk [vmem:[#allocation7] sm:$0xff] %vm158_vm1, %v149_v8 }
 0x182   :  { %257 = shalt.err (!%p254_p6)
}
 0x183   :  { %s258_s10 = scalar_lea.hbm %s341_s2, 256 }
 0x184   :  { %p259_p7 = scmp.ne.s32.totalorder %s341_s2, %s258_s10  ;;  %p262_p8 = scmp.lt.u32.totalorder %s258_s10, %s341_s2 }
 0x186   :  { %p264_p9 = pnand %p262_p8, %p259_p7 }
 0x188   :  { %267 = shalt.err (!%p264_p9)
}
 0x189   :  { %172 = dma.vmem_to_hbm [thread:$0]  %s167_s1, 256, %s341_s2, [#allocation4], %s275_s19, %s275_s19, %s276_s20  }
 0x18a   :  { %272 = dma.done.wait [#allocation4], 256  }
 0x18b   :  { %273 = vsyncadd [#allocation4], 4294967040 }
 0x18c   :  { %176 = vsyncpa [#allocation3], 1 }
 0x18d   :  { %177 = vsyncpa [#allocation6], 1 }
 0x18e   :  { %178 = vsyncpa [#allocation4], 1 }

</bundles_post_ra>
